<compile_context>
chip_gen: v7x
topology: tpu7x:2x2x1
jax: 0.10.0
libtpu: 0.0.40
codegen_flags: <defaults>
</compile_context>

<pallas_src>
import functools

import jax
import jax.numpy as jnp
from jax.experimental import pallas as pl
from jax.experimental.pallas import tpu as pltpu  # noqa: F401  (kept for TPU backend selection/docs)


def _round_up(x, m):
    return (x + m - 1) // m * m


def lstm_kernel(x_ref, w_ref, c_ref, out_ref, *,
                n_layers, hidden_size, out_size, w_out_row, head_row, bn_eps):
    """Single invocation: unrolled layer loop + output head.

    x_ref: (B, H)          embedded input
    w_ref: (L, 3, H, H)    per-layer per-gate input->gate weights, pre-transposed,
                           gate order [i, o, g] (f dropped: f*c_prev == 0)
    c_ref: (R, 128)        packed constant slab:
                             rows [0, 3L)                : fused b_ih+b_hh, one row per
                                                           (layer, gate), cols 0:H
                             rows [w_out_row, +H)        : output Linear weight^T, cols 0:O
                             row  head_row + {0,1,2}     : b_out / gamma / beta, cols 0:O
    out_ref: (B, O)
    """
    H = hidden_size
    O = out_size

    h = x_ref[...]                                            # (B, H)
    for l in range(n_layers):                                 # static unroll, L is tiny
        # Three per-gate (B,H)x(H,H) dots: each gate lands in lanes 0..H-1 of its
        # own vreg, so every elementwise combine below is lane-aligned.
        i_g = jax.nn.sigmoid(
            jnp.dot(h, w_ref[l, 0], preferred_element_type=jnp.float32)
            + c_ref[3 * l + 0:3 * l + 1, :H])
        o_g = jax.nn.sigmoid(
            jnp.dot(h, w_ref[l, 1], preferred_element_type=jnp.float32)
            + c_ref[3 * l + 1:3 * l + 2, :H])
        g_g = jnp.tanh(
            jnp.dot(h, w_ref[l, 2], preferred_element_type=jnp.float32)
            + c_ref[3 * l + 2:3 * l + 3, :H])
        # f_gate * c_prev == 0 (zero initial state) -> c_new = i_g * g_g
        h = o_g * jnp.tanh(i_g * g_g)

    # Output head: Linear -> BatchNorm1d (batch stats, biased var) -> Tanh
    w_out = c_ref[w_out_row:w_out_row + H, :O]                # (H, O), static slice
    y = (jnp.dot(h, w_out, preferred_element_type=jnp.float32)
         + c_ref[head_row:head_row + 1, :O])                  # + b_out
    mu = jnp.mean(y, axis=0, keepdims=True)
    var = jnp.mean((y - mu) ** 2, axis=0, keepdims=True)      # biased var (PyTorch BN fwd)
    y = ((y - mu) * jax.lax.rsqrt(var + bn_eps)
         * c_ref[head_row + 1:head_row + 2, :O]               # * gamma
         + c_ref[head_row + 2:head_row + 3, :O])              # + beta
    out_ref[...] = jnp.tanh(y)


def prepack_params(w_ih, b_ih, b_hh, w_out, b_out, gamma, beta):
    """Run ONCE at parameter-load time (never in the per-step path).

    w_ih: (L, 4H, H) PyTorch LSTMCell weight_ih (gate order i, f, g, o).
    Returns (w_pack, const_slab, meta) consumed by lstm_forward().
    """
    L, _, H = w_ih.shape
    O = w_out.shape[0]

    # h_prev == c_prev == 0 every layer -> W_hh and the f-gate are mathematically dead.
    gate_rows = (slice(0, H), slice(3 * H, 4 * H), slice(2 * H, 3 * H))   # [i, o, g]
    w_pack = jnp.stack(
        [jnp.stack([w_ih[l, r, :].T for r in gate_rows], axis=0) for l in range(L)],
        axis=0)                                                # (L, 3, H, H)

    b = b_ih + b_hh                                            # fused LSTM biases (L, 4H)
    w_out_row = _round_up(3 * L, 8)                            # sublane-tile aligned
    head_row = w_out_row + H
    rows = _round_up(head_row + 3, 8)

    slab = jnp.zeros((rows, 128), jnp.float32)                 # one lane-dense constant block
    for l in range(L):
        for gi, r in enumerate(gate_rows):
            slab = slab.at[3 * l + gi, :H].set(b[l, r])
    slab = slab.at[w_out_row:w_out_row + H, :O].set(w_out.T)
    slab = slab.at[head_row + 0, :O].set(b_out)
    slab = slab.at[head_row + 1, :O].set(gamma)
    slab = slab.at[head_row + 2, :O].set(beta)

    meta = dict(n_layers=L, hidden_size=H, out_size=O,
                w_out_row=w_out_row, head_row=head_row)
    return w_pack, slab, meta


def lstm_forward(x2d, w_pack, const_slab, meta, *, bn_eps=1e-5):
    """x2d: (B, H); w_pack: (L, 3, H, H); const_slab: (R, 128)."""
    B = x2d.shape[0]
    O = meta["out_size"]
    kern = functools.partial(lstm_kernel, bn_eps=bn_eps, **meta)
    # No grid, no tiling: 3 input DMAs + 1 output DMA, total payload ~30 KiB,
    # trivially VMEM-resident on v5e / v6e / v7x (default full-array blocks).
    # Adding a grid at these shapes would only add ~0.35 us/step pipeline overhead.
    return pl.pallas_call(
        kern,
        out_shape=jax.ShapeDtypeStruct((B, O), jnp.float32),
    )(x2d, w_pack, const_slab)


def reference_forward(x2d, w_ih, w_hh, b_ih, b_hh, w_out, b_out, gamma, beta, eps=1e-5):
    """Pure-JAX reference mirroring the PyTorch forward (PyTorch i,f,g,o gate order)."""
    h_in = x2d
    H = x2d.shape[1]
    for l in range(w_ih.shape[0]):
        h0 = jnp.zeros_like(h_in)
        c0 = jnp.zeros_like(h_in)
        gates = h_in @ w_ih[l].T + b_ih[l] + h0 @ w_hh[l].T + b_hh[l]
        i, f, g, o = (gates[:, 0:H], gates[:, H:2 * H],
                      gates[:, 2 * H:3 * H], gates[:, 3 * H:4 * H])
        c = jax.nn.sigmoid(f) * c0 + jax.nn.sigmoid(i) * jnp.tanh(g)
        h_in = jax.nn.sigmoid(o) * jnp.tanh(c)
    y = h_in @ w_out.T + b_out
    mu = y.mean(0, keepdims=True)
    var = ((y - mu) ** 2).mean(0, keepdims=True)
    y = (y - mu) / jnp.sqrt(var + eps) * gamma + beta
    return jnp.tanh(y)


if __name__ == "__main__":
    # Small shapes consistent with the module: hidden_size = lstm_hidden_size = 32,
    # output_size = 16, n_layers = 2, effective batch after x.view(-1, H) is 8.
    B_OUTER, T, H = 2, 4, 32
    OUT = 16
    N_LAYERS = 2
    EPS = 1e-5

    key = jax.random.PRNGKey(0)
    ks = jax.random.split(key, 8)
    bound = 1.0 / jnp.sqrt(jnp.float32(H))

    x = jax.random.normal(ks[0], (B_OUTER, T, H), dtype=jnp.float32)

    # PyTorch LSTMCell parameters (gate order i, f, g, o along the 4H axis).
    w_ih = jax.random.uniform(ks[1], (N_LAYERS, 4 * H, H), minval=-bound, maxval=bound, dtype=jnp.float32)
    w_hh = jax.random.uniform(ks[2], (N_LAYERS, 4 * H, H), minval=-bound, maxval=bound, dtype=jnp.float32)
    b_ih = jax.random.uniform(ks[3], (N_LAYERS, 4 * H), minval=-bound, maxval=bound, dtype=jnp.float32)
    b_hh = jax.random.uniform(ks[4], (N_LAYERS, 4 * H), minval=-bound, maxval=bound, dtype=jnp.float32)
    w_out = jax.random.uniform(ks[5], (OUT, H), minval=-bound, maxval=bound, dtype=jnp.float32)
    b_out = jax.random.uniform(ks[6], (OUT,), minval=-bound, maxval=bound, dtype=jnp.float32)
    gamma = jnp.ones((OUT,), jnp.float32)   # BatchNorm1d affine defaults
    beta = jnp.zeros((OUT,), jnp.float32)

    # ---- one-time parameter packing (parameter-load time, NOT the per-step path) ----
    w_pack, const_slab, meta = prepack_params(w_ih, b_ih, b_hh, w_out, b_out, gamma, beta)
    w_pack = jax.block_until_ready(w_pack)
    const_slab = jax.block_until_ready(const_slab)

    # ---- per-step path: reshape glue + one pallas_call ----
    x2d = x.reshape(-1, H)                                    # x.view(-1, hidden_size)
    out = lstm_forward(x2d, w_pack, const_slab, meta, bn_eps=EPS)
    out = jax.block_until_ready(out)

    ref = reference_forward(x2d, w_ih, w_hh, b_ih, b_hh, w_out, b_out,
                            gamma.reshape(1, OUT), beta.reshape(1, OUT), EPS)
    assert out.shape == (B_OUTER * T, OUT)
    assert jnp.allclose(out, ref, atol=1e-5, rtol=1e-5), "mismatch vs pure-JAX reference"

    # TODO(synk): self.embed (nn.Linear) is never invoked in the reference forward(); omitted.
    print("KERNEL_OK")
</pallas_src>

<mosaic_0001>
module attributes {stable_mosaic.version = 11 : i64} {
  func.func @lstm_kernel(%arg0: memref<8x32xf32, #tpu.memory_space<vmem>>, %arg1: memref<2x3x32x32xf32, #tpu.memory_space<vmem>>, %arg2: memref<48x128xf32, #tpu.memory_space<vmem>>, %arg3: memref<8x16xf32, #tpu.memory_space<vmem>>) attributes {dimension_semantics = [], scalar_prefetch = 0 : i64, scratch_operands = 0 : i64, tpu.core_type = #tpu.core_type<tc>} {
    %c0 = arith.constant 0 : index
    %c0_0 = arith.constant 0 : index
    %0 = vector.load %arg0[%c0, %c0_0] : memref<8x32xf32, #tpu.memory_space<vmem>>, vector<8x32xf32>
    %c0_1 = arith.constant 0 : index
    %c0_2 = arith.constant 0 : index
    %c0_3 = arith.constant 0 : index
    %c0_4 = arith.constant 0 : index
    %1 = vector.load %arg1[%c0_1, %c0_2, %c0_3, %c0_4] : memref<2x3x32x32xf32, #tpu.memory_space<vmem>>, vector<1x1x32x32xf32>
    %2 = vector.shape_cast %1 : vector<1x1x32x32xf32> to vector<32x32xf32>
    %cst = arith.constant dense<0.000000e+00> : vector<8x32xf32>
    %3 = tpu.matmul %0, %2, %cst {dimension_numbers = #tpu.dot_dimension_numbers<[1], [0], [0], [1], [0, 0, 1, 1], [], []>} : vector<8x32xf32>, vector<32x32xf32>, vector<8x32xf32> -> vector<8x32xf32>
    %c0_5 = arith.constant 0 : index
    %c0_6 = arith.constant 0 : index
    %4 = vector.load %arg2[%c0_5, %c0_6] : memref<48x128xf32, #tpu.memory_space<vmem>>, vector<1x32xf32>
    %5 = vector.broadcast %4 : vector<1x32xf32> to vector<8x32xf32>
    %6 = arith.addf %3, %5 : vector<8x32xf32>
    %7 = arith.negf %6 : vector<8x32xf32>
    %8 = math.exp %7 : vector<8x32xf32>
    %cst_7 = arith.constant 1.000000e+00 : f32
    %9 = vector.broadcast %cst_7 : f32 to vector<8x32xf32>
    %10 = arith.addf %9, %8 : vector<8x32xf32>
    %11 = arith.divf %9, %10 : vector<8x32xf32>
    %c0_8 = arith.constant 0 : index
    %c1 = arith.constant 1 : index
    %c0_9 = arith.constant 0 : index
    %c0_10 = arith.constant 0 : index
    %12 = vector.load %arg1[%c0_8, %c1, %c0_9, %c0_10] : memref<2x3x32x32xf32, #tpu.memory_space<vmem>>, vector<1x1x32x32xf32>
    %13 = vector.shape_cast %12 : vector<1x1x32x32xf32> to vector<32x32xf32>
    %cst_11 = arith.constant dense<0.000000e+00> : vector<8x32xf32>
    %14 = tpu.matmul %0, %13, %cst_11 {dimension_numbers = #tpu.dot_dimension_numbers<[1], [0], [0], [1], [0, 0, 1, 1], [], []>} : vector<8x32xf32>, vector<32x32xf32>, vector<8x32xf32> -> vector<8x32xf32>
    %c1_12 = arith.constant 1 : index
    %c0_13 = arith.constant 0 : index
    %15 = vector.load %arg2[%c1_12, %c0_13] : memref<48x128xf32, #tpu.memory_space<vmem>>, vector<1x32xf32>
    %16 = vector.broadcast %15 : vector<1x32xf32> to vector<8x32xf32>
    %17 = arith.addf %14, %16 : vector<8x32xf32>
    %18 = arith.negf %17 : vector<8x32xf32>
    %19 = math.exp %18 : vector<8x32xf32>
    %cst_14 = arith.constant 1.000000e+00 : f32
    %20 = vector.broadcast %cst_14 : f32 to vector<8x32xf32>
    %21 = arith.addf %20, %19 : vector<8x32xf32>
    %22 = arith.divf %20, %21 : vector<8x32xf32>
    %c0_15 = arith.constant 0 : index
    %c2 = arith.constant 2 : index
    %c0_16 = arith.constant 0 : index
    %c0_17 = arith.constant 0 : index
    %23 = vector.load %arg1[%c0_15, %c2, %c0_16, %c0_17] : memref<2x3x32x32xf32, #tpu.memory_space<vmem>>, vector<1x1x32x32xf32>
    %24 = vector.shape_cast %23 : vector<1x1x32x32xf32> to vector<32x32xf32>
    %cst_18 = arith.constant dense<0.000000e+00> : vector<8x32xf32>
    %25 = tpu.matmul %0, %24, %cst_18 {dimension_numbers = #tpu.dot_dimension_numbers<[1], [0], [0], [1], [0, 0, 1, 1], [], []>} : vector<8x32xf32>, vector<32x32xf32>, vector<8x32xf32> -> vector<8x32xf32>
    %c2_19 = arith.constant 2 : index
    %c0_20 = arith.constant 0 : index
    %26 = vector.load %arg2[%c2_19, %c0_20] : memref<48x128xf32, #tpu.memory_space<vmem>>, vector<1x32xf32>
    %27 = vector.broadcast %26 : vector<1x32xf32> to vector<8x32xf32>
    %28 = arith.addf %25, %27 : vector<8x32xf32>
    %29 = math.tanh %28 : vector<8x32xf32>
    %30 = arith.mulf %11, %29 : vector<8x32xf32>
    %31 = math.tanh %30 : vector<8x32xf32>
    %32 = arith.mulf %22, %31 : vector<8x32xf32>
    %c1_21 = arith.constant 1 : index
    %c0_22 = arith.constant 0 : index
    %c0_23 = arith.constant 0 : index
    %c0_24 = arith.constant 0 : index
    %33 = vector.load %arg1[%c1_21, %c0_22, %c0_23, %c0_24] : memref<2x3x32x32xf32, #tpu.memory_space<vmem>>, vector<1x1x32x32xf32>
    %34 = vector.shape_cast %33 : vector<1x1x32x32xf32> to vector<32x32xf32>
    %cst_25 = arith.constant dense<0.000000e+00> : vector<8x32xf32>
    %35 = tpu.matmul %32, %34, %cst_25 {dimension_numbers = #tpu.dot_dimension_numbers<[1], [0], [0], [1], [0, 0, 1, 1], [], []>} : vector<8x32xf32>, vector<32x32xf32>, vector<8x32xf32> -> vector<8x32xf32>
    %c3 = arith.constant 3 : index
    %c0_26 = arith.constant 0 : index
    %36 = vector.load %arg2[%c3, %c0_26] : memref<48x128xf32, #tpu.memory_space<vmem>>, vector<1x32xf32>
    %37 = vector.broadcast %36 : vector<1x32xf32> to vector<8x32xf32>
    %38 = arith.addf %35, %37 : vector<8x32xf32>
    %39 = arith.negf %38 : vector<8x32xf32>
    %40 = math.exp %39 : vector<8x32xf32>
    %cst_27 = arith.constant 1.000000e+00 : f32
    %41 = vector.broadcast %cst_27 : f32 to vector<8x32xf32>
    %42 = arith.addf %41, %40 : vector<8x32xf32>
    %43 = arith.divf %41, %42 : vector<8x32xf32>
    %c1_28 = arith.constant 1 : index
    %c1_29 = arith.constant 1 : index
    %c0_30 = arith.constant 0 : index
    %c0_31 = arith.constant 0 : index
    %44 = vector.load %arg1[%c1_28, %c1_29, %c0_30, %c0_31] : memref<2x3x32x32xf32, #tpu.memory_space<vmem>>, vector<1x1x32x32xf32>
    %45 = vector.shape_cast %44 : vector<1x1x32x32xf32> to vector<32x32xf32>
    %cst_32 = arith.constant dense<0.000000e+00> : vector<8x32xf32>
    %46 = tpu.matmul %32, %45, %cst_32 {dimension_numbers = #tpu.dot_dimension_numbers<[1], [0], [0], [1], [0, 0, 1, 1], [], []>} : vector<8x32xf32>, vector<32x32xf32>, vector<8x32xf32> -> vector<8x32xf32>
    %c4 = arith.constant 4 : index
    %c0_33 = arith.constant 0 : index
    %47 = vector.load %arg2[%c4, %c0_33] : memref<48x128xf32, #tpu.memory_space<vmem>>, vector<1x32xf32>
    %48 = vector.broadcast %47 : vector<1x32xf32> to vector<8x32xf32>
    %49 = arith.addf %46, %48 : vector<8x32xf32>
    %50 = arith.negf %49 : vector<8x32xf32>
    %51 = math.exp %50 : vector<8x32xf32>
    %cst_34 = arith.constant 1.000000e+00 : f32
    %52 = vector.broadcast %cst_34 : f32 to vector<8x32xf32>
    %53 = arith.addf %52, %51 : vector<8x32xf32>
    %54 = arith.divf %52, %53 : vector<8x32xf32>
    %c1_35 = arith.constant 1 : index
    %c2_36 = arith.constant 2 : index
    %c0_37 = arith.constant 0 : index
    %c0_38 = arith.constant 0 : index
    %55 = vector.load %arg1[%c1_35, %c2_36, %c0_37, %c0_38] : memref<2x3x32x32xf32, #tpu.memory_space<vmem>>, vector<1x1x32x32xf32>
    %56 = vector.shape_cast %55 : vector<1x1x32x32xf32> to vector<32x32xf32>
    %cst_39 = arith.constant dense<0.000000e+00> : vector<8x32xf32>
    %57 = tpu.matmul %32, %56, %cst_39 {dimension_numbers = #tpu.dot_dimension_numbers<[1], [0], [0], [1], [0, 0, 1, 1], [], []>} : vector<8x32xf32>, vector<32x32xf32>, vector<8x32xf32> -> vector<8x32xf32>
    %c5 = arith.constant 5 : index
    %c0_40 = arith.constant 0 : index
    %58 = vector.load %arg2[%c5, %c0_40] : memref<48x128xf32, #tpu.memory_space<vmem>>, vector<1x32xf32>
    %59 = vector.broadcast %58 : vector<1x32xf32> to vector<8x32xf32>
    %60 = arith.addf %57, %59 : vector<8x32xf32>
    %61 = math.tanh %60 : vector<8x32xf32>
    %62 = arith.mulf %43, %61 : vector<8x32xf32>
    %63 = math.tanh %62 : vector<8x32xf32>
    %64 = arith.mulf %54, %63 : vector<8x32xf32>
    %c8 = arith.constant 8 : index
    %c0_41 = arith.constant 0 : index
    %65 = vector.load %arg2[%c8, %c0_41] : memref<48x128xf32, #tpu.memory_space<vmem>>, vector<32x16xf32>
    %cst_42 = arith.constant dense<0.000000e+00> : vector<8x16xf32>
    %66 = tpu.matmul %64, %65, %cst_42 {dimension_numbers = #tpu.dot_dimension_numbers<[1], [0], [0], [1], [0, 0, 1, 1], [], []>} : vector<8x32xf32>, vector<32x16xf32>, vector<8x16xf32> -> vector<8x16xf32>
    %c40 = arith.constant 40 : index
    %c0_43 = arith.constant 0 : index
    %67 = vector.load %arg2[%c40, %c0_43] : memref<48x128xf32, #tpu.memory_space<vmem>>, vector<1x16xf32>
    %68 = vector.broadcast %67 : vector<1x16xf32> to vector<8x16xf32>
    %69 = arith.addf %66, %68 : vector<8x16xf32>
    %cst_44 = arith.constant dense<0.000000e+00> : vector<16xf32>
    %70 = vector.multi_reduction <add>, %69, %cst_44 [0] : vector<8x16xf32> to vector<16xf32>
    %71 = vector.shape_cast %70 : vector<16xf32> to vector<1x16xf32>
    %cst_45 = arith.constant 8.000000e+00 : f32
    %72 = vector.broadcast %cst_45 : f32 to vector<1x16xf32>
    %73 = arith.divf %71, %72 : vector<1x16xf32>
    %74 = vector.broadcast %73 : vector<1x16xf32> to vector<8x16xf32>
    %75 = arith.subf %69, %74 : vector<8x16xf32>
    %76 = arith.mulf %75, %75 : vector<8x16xf32>
    %cst_46 = arith.constant dense<0.000000e+00> : vector<16xf32>
    %77 = vector.multi_reduction <add>, %76, %cst_46 [0] : vector<8x16xf32> to vector<16xf32>
    %78 = vector.shape_cast %77 : vector<16xf32> to vector<1x16xf32>
    %cst_47 = arith.constant 8.000000e+00 : f32
    %79 = vector.broadcast %cst_47 : f32 to vector<1x16xf32>
    %80 = arith.divf %78, %79 : vector<1x16xf32>
    %81 = vector.broadcast %73 : vector<1x16xf32> to vector<8x16xf32>
    %82 = arith.subf %69, %81 : vector<8x16xf32>
    %cst_48 = arith.constant 9.99999974E-6 : f32
    %83 = vector.broadcast %cst_48 : f32 to vector<1x16xf32>
    %84 = arith.addf %80, %83 : vector<1x16xf32>
    %85 = math.rsqrt %84 : vector<1x16xf32>
    %86 = vector.broadcast %85 : vector<1x16xf32> to vector<8x16xf32>
    %87 = arith.mulf %82, %86 : vector<8x16xf32>
    %c41 = arith.constant 41 : index
    %c0_49 = arith.constant 0 : index
    %88 = vector.load %arg2[%c41, %c0_49] : memref<48x128xf32, #tpu.memory_space<vmem>>, vector<1x16xf32>
    %89 = vector.broadcast %88 : vector<1x16xf32> to vector<8x16xf32>
    %90 = arith.mulf %87, %89 : vector<8x16xf32>
    %c42 = arith.constant 42 : index
    %c0_50 = arith.constant 0 : index
    %91 = vector.load %arg2[%c42, %c0_50] : memref<48x128xf32, #tpu.memory_space<vmem>>, vector<1x16xf32>
    %92 = vector.broadcast %91 : vector<1x16xf32> to vector<8x16xf32>
    %93 = arith.addf %90, %92 : vector<8x16xf32>
    %94 = math.tanh %93 : vector<8x16xf32>
    %c0_51 = arith.constant 0 : index
    %c0_52 = arith.constant 0 : index
    %95 = vector.load %arg3[%c0_51, %c0_52] : memref<8x16xf32, #tpu.memory_space<vmem>>, vector<8x16xf32>
    tpu.vector_store %arg3[%c0_51, %c0_52], %94 {strides = array<i32>} : memref<8x16xf32, #tpu.memory_space<vmem>>, vector<8x16xf32>,
    return
  }
}

</mosaic_0001>

<bundles_post_ra>
// kernel: tpu_custom_call.1
= control target key start
LH: loop header
LB: loop body
LE: loop exit
PB: predicated region body
PF: predicated region fallthrough
CT: control target
= control target key end

     0   :  { %8 = vsyncpa [#allocation3], 0  ;;  %s1134_s0 = inlined_call_operand.hbm [shape: f32[8,32], index: 0, kind: input, shape index: {}]   ;;  %s1135_s1 = inlined_call_operand.hbm [shape: f32[2,3,32,32], index: 1, kind: input, shape index: {}]   ;;  %s1136_s2 = inlined_call_operand.hbm [shape: f32[48,128], index: 2, kind: input, shape index: {}]   ;;  %s1137_s3 = inlined_call_operand.hbm [shape: f32[8,16], index: 3, kind: output, shape index: {}]  }
   0x1   :  { %9 = vsyncpa [#allocation6], 0 }
   0x2   :  { %10 = vsyncpa [#allocation4], 0  ;;  %s1013_s12 = smov [#allocation5]   ;;  %s919_s16 = scalar_lea.hbm %s1135_s1, 3072 }
   0x3   :  { %s26_s13 = sshll.u32 %s1013_s12, 4  ;;  %p920_p0 = scmp.ne.s32.totalorder %s1135_s1, %s919_s16  ;;  %s27_s13 = int_to_ptr.vmem [resolvable:$true] %s26_s13 }
   0x4   :  { %p923_p1 = scmp.lt.u32.totalorder %s919_s16, %s1135_s1 }
   0x6   :  { %p925_p2 = pnand %p923_p1, %p920_p0 }
   0x8   :  { %928 = shalt.err (!%p925_p2)
}
   0x9   :  { %s929_s21 = scalar_lea.vmem %s27_s13, 3072  ;;  %p934_p4 = scmp.lt.s32.totalorder %s27_s13, %s27_s13 }
   0xa   :  { %p930_p3 = scmp.ne.s32.totalorder %s27_s13, %s929_s21  ;;  %p935_p5 = scmp.lt.s32.totalorder %s929_s21, %s929_s21 }
   0xc   :  { %p936_p6 = por %p935_p5, %p934_p4 }
   0xe   :  { %p937_p7 = pnand %p936_p6, %p930_p3 }
  0x10   :  { %940 = shalt.err (!%p937_p7)
}
  0x11   :  { %s1014_s22 = smov 128   ;;  %s1015_s23 = smov 8  }
  0x12   :  { %32 = dma.hbm_to_vmem [thread:$0]  %s1135_s1, 3072, %s27_s13, [#allocation6], %s1014_s22, %s1014_s22, %s1015_s23  }
  0x13   :  { %s1016_s26 = smov [#allocation2]   ;;  %s1017_s28 = smov [#allocation7]  }
  0x14   :  { %s17_s27 = sshll.u32 %s1016_s26, 4  ;;  %s38_s29 = sshll.u32 %s1017_s28, 4  ;;  %s18_s27 = int_to_ptr.vmem [resolvable:$true] %s17_s27  ;;  %s39_s29 = int_to_ptr.vmem [resolvable:$true] %s38_s29 }
  0x15   :  { %s941_s5 = scalar_lea.hbm %s1134_s0, 128 }
  0x16   :  { %p942_p8 = scmp.ne.s32.totalorder %s1134_s0, %s941_s5  ;;  %p945_p9 = scmp.lt.u32.totalorder %s941_s5, %s1134_s0 }
  0x18   :  { %p947_p10 = pnand %p945_p9, %p942_p8 }
  0x1a   :  { %950 = shalt.err (!%p947_p10)
}
  0x1b   :  { %s951_s1 = scalar_lea.vmem %s18_s27, 128  ;;  %p956_p12 = scmp.lt.s32.totalorder %s18_s27, %s18_s27 }
  0x1c   :  { %p952_p11 = scmp.ne.s32.totalorder %s18_s27, %s951_s1  ;;  %p957_p13 = scmp.lt.s32.totalorder %s951_s1, %s951_s1 }
  0x1e   :  { %p958_p0 = por %p957_p13, %p956_p12 }
  0x20   :  { %p959_p1 = pnand %p958_p0, %p952_p11 }
  0x22   :  { %962 = shalt.err (!%p959_p1)
}
  0x23   :  { %20 = dma.hbm_to_vmem [thread:$0]  %s1134_s0, 128, %s18_s27, [#allocation3]  }
  0x24   :  { %s963_s14 = scalar_lea.hbm %s1136_s2, 768 }
  0x25   :  { %p964_p2 = scmp.ne.s32.totalorder %s1136_s2, %s963_s14  ;;  %p967_p3 = scmp.lt.u32.totalorder %s963_s14, %s1136_s2 }
  0x27   :  { %p969_p4 = pnand %p967_p3, %p964_p2 }
  0x29   :  { %972 = shalt.err (!%p969_p4)
}
  0x2a   :  { %s973_s19 = scalar_lea.vmem %s39_s29, 768  ;;  %p978_p6 = scmp.lt.s32.totalorder %s39_s29, %s39_s29 }
  0x2b   :  { %p974_p5 = scmp.ne.s32.totalorder %s39_s29, %s973_s19  ;;  %p979_p7 = scmp.lt.s32.totalorder %s973_s19, %s973_s19 }
  0x2d   :  { %p980_p8 = por %p979_p7, %p978_p6 }
  0x2f   :  { %p981_p9 = pnand %p980_p8, %p974_p5 }
  0x31   :  { %984 = shalt.err (!%p981_p9)
}
  0x32   :  { %44 = dma.hbm_to_vmem [thread:$0]  %s1136_s2, 768, %s39_s29, [#allocation6], %s1014_s22, %s1014_s22, %s1015_s23  }
  0x33   :  { %1007 = dma.done.wait [#allocation3], 128  }
  0x34   :  { %1008 = vsyncadd [#allocation3], 4294967168 }
  0x35   :  { %1009 = dma.done.wait [#allocation6], 3840  }
  0x36   :  { %1010 = vsyncadd [#allocation6], 4294963456  ;;  %v1018_v0 = vmov 0.0|0.0   ;;  %vm1019_vm0 = vmmov 0   ;;  %v1020_v1 = vmov 0.0   ;;  %v55_v2 = vld [vmem:[#allocation5] sm:$0xff] }
  0x37   :  { %840 = vmatprep.subr.bf16.mxu0 %v1018_v0  ;;  %771 = vmatprep.mubr.msk.f32.mxu0 %vm1019_vm0, %v1020_v1  ;;  %v56_v3 = vld [vmem:[#allocation5 + $0x8] sm:$0xff]  ;;  %v57_v4 = vld [vmem:[#allocation5 + $0x10] sm:$0xff]  ;;  %v58_v6 = vld [vmem:[#allocation5 + $0x18] sm:$0xff]  ;;  %vm64_vm1 = vcmask 261120   ;;  %vm655_vm2 = vcmask 130048   ;;  %s1021_s2 = smov [#allocation8]  }
  0x38   :  { %846 = vmatprep.subr.bf16.mxu1 %v1018_v0  ;;  %782 = vmatprep.mubr.msk.f32.mxu1 %vm1019_vm0, %v1020_v1  ;;  %v841_v5 = vpack.c.bf16 %v56_v3, %v55_v2  ;;  %v145_v7 = vld [vmem:[#allocation5 + $0x20] sm:$0xff]  ;;  %v146_v8 = vld [vmem:[#allocation5 + $0x28] sm:$0xff]  ;;  %v844_v9 = vpack.c.bf16 %v58_v6, %v57_v4  ;;  %v147_v11 = vld [vmem:[#allocation5 + $0x30] sm:$0xff]  ;;  %s698_s21 = sshll.u32 %s1021_s2, 4  ;;  %s699_s21 = int_to_ptr.vmem [resolvable:$true] %s698_s21 }
  0x39   :  { %v847_v10 = vpack.c.bf16 %v146_v8, %v145_v7  ;;  %v148_v12 = vld [vmem:[#allocation5 + $0x38] sm:$0xff]  ;;  %v231_v13 = vld [vmem:[#allocation5 + $0x40] sm:$0xff]  ;;  %v232_v14 = vld [vmem:[#allocation5 + $0x48] sm:$0xff]  ;;  %s985_s22 = scalar_lea.vmem %s699_s21, 128  ;;  %p990_p11 = scmp.lt.s32.totalorder %s699_s21, %s699_s21 }
  0x3a   :  { %842 = vmatpush3.bf16.msra.mxu0 %v841_v5  ;;  %v850_v15 = vpack.c.bf16 %v148_v12, %v147_v11  ;;  %v54_v16 = vld [vmem:[#allocation2] sm:$0xff]  ;;  %v853_v17 = vpack.c.bf16 %v232_v14, %v231_v13  ;;  %v233_v18 = vld [vmem:[#allocation5 + $0x50] sm:$0xff]  ;;  %v315_v21 = vld [vmem:[#allocation5 + $0x60] sm:$0xff]  ;;  %p986_p10 = scmp.ne.s32.totalorder %s699_s21, %s985_s22  ;;  %p991_p12 = scmp.lt.s32.totalorder %s985_s22, %s985_s22 }
  0x3b   :  { %843 = vmatprep.subr.bf16.mxu0 %v1018_v0  ;;  %848 = vmatpush3.bf16.msra.mxu1 %v847_v10  ;;  %v234_v19 = vld [vmem:[#allocation5 + $0x58] sm:$0xff]  ;;  %v316_v22 = vld [vmem:[#allocation5 + $0x68] sm:$0xff]  ;;  %v404_v23 = vld [vmem:[#allocation5 + $0x80] sm:$0xff] }
  0x3c   :  { %849 = vmatprep.subr.bf16.mxu1 %v1018_v0  ;;  %v856_v20 = vpack.c.bf16 %v234_v19, %v233_v18  ;;  %v859_v24 = vpack.c.bf16 %v316_v22, %v315_v21  ;;  %v405_v25 = vld [vmem:[#allocation5 + $0x88] sm:$0xff]  ;;  %v317_v26 = vld [vmem:[#allocation5 + $0x70] sm:$0xff]  ;;  %v318_v27 = vld [vmem:[#allocation5 + $0x78] sm:$0xff]  ;;  %p992_p13 = por %p991_p12, %p990_p11 }
  0x3d   :  { %v865_v28 = vpack.c.bf16 %v405_v25, %v404_v23  ;;  %v406_v29 = vld [vmem:[#allocation5 + $0x90] sm:$0xff]  ;;  %v407_v30 = vld [vmem:[#allocation5 + $0x98] sm:$0xff]  ;;  %v862_v31 = vpack.c.bf16 %v318_v27, %v317_v26  ;;  %v708_v33 = vld [vmem:[#allocation7] ss:$0 sm:$0xff] }
  0x3e   :  { %845 = vmatpush3.bf16.msra.mxu0 %v844_v9  ;;  %v868_v32 = vpack.c.bf16 %v407_v30, %v406_v29  ;;  %v711_v37 = vld [vmem:[#allocation7 + $0x1] ss:$0 sm:$0xff]  ;;  %v714_v44 = vld [vmem:[#allocation7 + $0x2] ss:$0 sm:$0xff]  ;;  %v491_v55 = vld [vmem:[#allocation5 + $0xa8] sm:$0xff]  ;;  %p993_p0 = pnand %p992_p13, %p986_p10 }
  0x3f   :  { %852 = vmatprep.subr.bf16.mxu0 %v1018_v0  ;;  %851 = vmatpush3.bf16.msra.mxu1 %v850_v15  ;;  %v490_v54 = vld [vmem:[#allocation5 + $0xa0] sm:$0xff]  ;;  %v492_v60 = vld [vmem:[#allocation5 + $0xb0] sm:$0xff]  ;;  %v493_v61 = vld [vmem:[#allocation5 + $0xb8] sm:$0xff] }
  0x40   :  { %858 = vmatprep.subr.bf16.mxu1 %v1018_v0  ;;  %v871_v58 = vpack.c.bf16 %v491_v55, %v490_v54  ;;  %v874_v62 = vpack.c.bf16 %v493_v61, %v492_v60  ;;  %v573_v63 = vld [vmem:[#allocation7 + $0x8] sm:$0xff]  ;;  %v574_v2 = vld [vmem:[#allocation7 + $0x10] sm:$0xff]  ;;  %v575_v3 = vld [vmem:[#allocation7 + $0x18] sm:$0xff] }
  0x41   :  { %772 = vmatmul.mubr.msk.f32.vlgmr.msra.gmra.mrb[0].mxu0 %vm64_vm1, %v54_v16  ;;  %v877_v4 = vpack.c.bf16 %v574_v2, %v573_v63  ;;  %v576_v5 = vld [vmem:[#allocation7 + $0x20] sm:$0xff]  ;;  %v724_v29 = vld [vmem:[#allocation7 + $0x28] ss:$0 sm:$0xff]  ;;  %v727_v55 = vld [vmem:[#allocation7 + $0x2a] ss:$0 sm:$0xff] }
  0x42   :  { %854 = vmatpush3.bf16.msra.mxu0 %v853_v17  ;;  %793 = vmatprep.mubr.msk.f32.mxu0 %vm1019_vm0, %v1020_v1  ;;  %v880_v6 = vpack.c.bf16 %v576_v5, %v575_v3  ;;  %v716_v7 = vld [vmem:[#allocation7 + $0x3] ss:$0 sm:$0xff]  ;;  %v722_v18 = vld [vmem:[#allocation7 + $0x5] ss:$0 sm:$0xff] }
  0x43   :  { %855 = vmatprep.subr.bf16.mxu0 %v1018_v0  ;;  %783 = vmatmul.mubr.msk.f32.vlgmr.msra.gmra.mrb[0].mxu1 %vm64_vm1, %v54_v16 }
  0x44   :  { %804 = vmatprep.mubr.msk.f32.mxu1 %vm1019_vm0, %v1020_v1  ;;  %860 = vmatpush3.bf16.msra.mxu1 %v859_v24 }
  0x45   :  { %861 = vmatprep.subr.bf16.mxu1 %v1018_v0 }
  0x46   :  { %857 = vmatpush3.bf16.msra.mxu0 %v856_v20 }
  0x47   :  { %864 = vmatprep.subr.bf16.mxu0 %v1018_v0 }
  0x48   :  { %863 = vmatpush3.bf16.msra.mxu1 %v862_v31 }
  0x49   :  { %794 = vmatmul.mubr.msk.f32.vlgmr.msra.gmra.mrb[2].mxu0 %vm64_vm1, %v54_v16  ;;  %870 = vmatprep.subr.bf16.mxu1 %v1018_v0 }
  0x4a   :  { %815 = vmatprep.mubr.msk.f32.mxu0 %vm1019_vm0, %v1020_v1  ;;  %866 = vmatpush3.bf16.msra.mxu0 %v865_v28 }
  0x4b   :  { %867 = vmatprep.subr.bf16.mxu0 %v1018_v0 }
  0x4e   :  { %869 = vmatpush3.bf16.msra.mxu0 %v868_v32 }
  0x4f   :  { %876 = vmatprep.subr.bf16.mxu0 %v1018_v0 }
 0x114   :  { %v134_v34 = vpop.f32.mrb[0].mxu0 }
 0x115   :  { %v135_v35 = vadd.f32 %v708_v33, %v134_v34  ;;  %v773_v36 = vpop.f32.mrb[1].mxu0 }
 0x116   :  { %v220_v38 = vpop.f32.mrb[0].mxu1 }
 0x117   :  { %v710_v39 = vmul.f32 -1.442695, %v135_v35  ;;  %v784_v40 = vpop.f32.mrb[1].mxu1  ;;  %v221_v41 = vadd.f32 %v711_v37, %v220_v38 }
 0x119   :  { %891 = vpow2.f32 %v710_v39  ;;  %v713_v42 = vmul.f32 -1.442695, %v221_v41 }
 0x11b   :  { %893 = vpow2.f32 %v713_v42 }
 0x11c   :  { %v306_v43 = vpop.f32.mrb[2].mxu0 }
 0x11d   :  { %v795_v45 = vpop.f32.mrb[3].mxu0  ;;  %v307_v46 = vadd.f32 %v714_v44, %v306_v43 }
 0x11f   :  { %895 = vtanh.f32 %v307_v46 }
 0x123   :  { %v892_v47 = vpop.eup %891 }
 0x124   :  { %v141_v48 = vadd.f32 1.0, %v892_v47 }
 0x125   :  { %v894_v49 = vpop.eup %893 }
 0x126   :  { %897 = vrcp.f32 %v141_v48  ;;  %v227_v50 = vadd.f32 1.0, %v894_v49 }
 0x128   :  { %899 = vrcp.f32 %v227_v50 }
 0x129   :  { %v896_v51 = vpop.eup %895 }
 0x130   :  { %v898_v52 = vpop.eup %897 }
 0x131   :  { %v311_v53 = vmul.f32 %v898_v52, %v896_v51 }
 0x132   :  { %v900_v56 = vpop.eup %899 }
 0x133   :  { %901 = vtanh.f32 %v311_v53  ;;  %v726_v53 = vld [vmem:[#allocation7 + $0x29] ss:$0 sm:$0xff] }
 0x13d   :  { %v902_v57 = vpop.eup %901 }
 0x13e   :  { %v313_v59 = vmul.f32 %v902_v57, %v900_v56 }
 0x140   :  { %805 = vmatmul.mubr.msk.f32.vlgmr.msra.gmra.mrb[2].mxu1 %vm64_vm1, %v313_v59  ;;  %816 = vmatmul.mubr.msk.f32.vlgmr.msra.gmra.mrb[4].mxu0 %vm64_vm1, %v313_v59 }
 0x141   :  { %872 = vmatpush3.bf16.msra.mxu1 %v871_v58  ;;  %826 = vmatprep.mubr.msk.f32.mxu1 %vm1019_vm0, %v1020_v1 }
 0x142   :  { %873 = vmatprep.subr.bf16.mxu1 %v1018_v0  ;;  %837 = vmatprep.mubr.msk.f32.mxu0 %vm1019_vm0, %v1020_v1  ;;  %v719_v1 = vld [vmem:[#allocation7 + $0x4] ss:$0 sm:$0xff] }
 0x143   :  { %878 = vmatpush3.bf16.msra.mxu0 %v877_v4 }
 0x144   :  { %879 = vmatprep.subr.bf16.mxu0 %v1018_v0 }
 0x145   :  { %875 = vmatpush3.bf16.msra.mxu1 %v874_v62 }
 0x147   :  { %881 = vmatpush3.bf16.msra.mxu0 %v880_v6 }
 0x148   :  { %827 = vmatmul.mubr.msk.f32.vlgmr.msra.gmra.mrb[4].mxu1 %vm64_vm1, %v313_v59 }
 0x213   :  { %v393_v8 = vpop.f32.mrb[2].mxu1  ;;  %v479_v9 = vpop.f32.mrb[4].mxu0 }
 0x214   :  { %v394_v10 = vadd.f32 %v716_v7, %v393_v8  ;;  %v806_v11 = vpop.f32.mrb[3].mxu1  ;;  %v817_v12 = vpop.f32.mrb[5].mxu0  ;;  %v480_v14 = vadd.f32 %v719_v1, %v479_v9 }
 0x216   :  { %v718_v13 = vmul.f32 -1.442695, %v394_v10  ;;  %v721_v16 = vmul.f32 -1.442695, %v480_v14 }
 0x218   :  { %903 = vpow2.f32 %v718_v13 }
 0x219   :  { %905 = vpow2.f32 %v721_v16 }
 0x21b   :  { %v565_v15 = vpop.f32.mrb[4].mxu1 }
 0x21c   :  { %v828_v17 = vpop.f32.mrb[5].mxu1  ;;  %v566_v19 = vadd.f32 %v722_v18, %v565_v15 }
 0x21e   :  { %907 = vtanh.f32 %v566_v19 }
 0x222   :  { %v904_v20 = vpop.eup %903 }
 0x223   :  { %v400_v21 = vadd.f32 1.0, %v904_v20  ;;  %v906_v0 = vpop.eup %905 }
 0x224   :  { %v486_v22 = vadd.f32 1.0, %v906_v0 }
 0x225   :  { %909 = vrcp.f32 %v400_v21 }
 0x226   :  { %911 = vrcp.f32 %v486_v22 }
 0x228   :  { %v908_v23 = vpop.eup %907 }
 0x22f   :  { %v910_v24 = vpop.eup %909 }
 0x230   :  { %v570_v25 = vmul.f32 %v910_v24, %v908_v23  ;;  %v912_v26 = vpop.eup %911 }
 0x232   :  { %913 = vtanh.f32 %v570_v25 }
 0x23c   :  { %v914_v27 = vpop.eup %913 }
 0x23d   :  { %v572_v28 = vmul.f32 %v914_v27, %v912_v26 }
 0x23f   :  { %838 = vmatmul.mubr.msk.f32.vlgmr.msra.gmra.mrb[6].mxu0 %vm64_vm1, %v572_v28 }
 0x312   :  { %v651_v30 = vpop.f32.mrb[6].mxu0 }
 0x313   :  { %v652_v31 = vadd.f32 %v724_v29, %v651_v30  ;;  %v839_v32 = vpop.f32.mrb[7].mxu0 }
 0x315   :  { %v656_v33 = vsel %vm655_vm2, %v652_v31, 0.0 }
 0x316   :  { %v657_v34 = vrot.slane %v656_v33, 4 }
 0x318   :  { %v658_v35 = vadd.f32 %v657_v34, %v656_v33 }
 0x31a   :  { %v659_v36 = vrot.slane %v658_v35, 2 }
 0x31c   :  { %v660_v37 = vadd.f32 %v659_v36, %v658_v35 }
 0x31e   :  { %v661_v38 = vrot.slane %v660_v37, 1 }
 0x320   :  { %v662_v39 = vadd.f32 %v661_v38, %v660_v37 }
 0x322   :  { %v664_v40 = vmul.f32 0.125, %v662_v39 }
 0x324   :  { %v665_v41 = vsub.f32 %v652_v31, %v664_v40 }
 0x326   :  { %v666_v42 = vmul.f32 %v665_v41, %v665_v41 }
 0x328   :  { %v667_v43 = vsel %vm655_vm2, %v666_v42, 0.0 }
 0x329   :  { %v668_v44 = vrot.slane %v667_v43, 4 }
 0x32b   :  { %v669_v45 = vadd.f32 %v668_v44, %v667_v43 }
 0x32d   :  { %v670_v46 = vrot.slane %v669_v45, 2 }
 0x32f   :  { %v671_v47 = vadd.f32 %v670_v46, %v669_v45 }
 0x331   :  { %v672_v48 = vrot.slane %v671_v47, 1 }
 0x333   :  { %v673_v49 = vadd.f32 %v672_v48, %v671_v47 }
 0x335   :  { %v674_v50 = vmul.f32 0.125, %v673_v49 }
 0x337   :  { %v675_v51 = vadd.f32 1e-05, %v674_v50 }
 0x339   :  { %915 = vrsqrt.f32 %v675_v51 }
 0x343   :  { %v916_v52 = vpop.eup %915 }
 0x344   :  { %v677_v54 = vmul.f32 %v916_v52, %v665_v41 }
 0x346   :  { %v683_v56 = vmul.f32 %v726_v53, %v677_v54 }
 0x348   :  { %v689_v57 = vadd.f32 %v727_v55, %v683_v56 }
 0x34a   :  { %917 = vtanh.f32 %v689_v57 }
 0x354   :  { %v918_v58 = vpop.eup %917 }
 0x355   :  { %691 = vst.msk [vmem:[#allocation8] sm:$0xff] %vm655_vm2, %v918_v58 }
 0x356   :  { %996 = shalt.err (!%p993_p0)
}
 0x357   :  { %s997_s25 = scalar_lea.hbm %s1137_s3, 128 }
 0x358   :  { %p998_p1 = scmp.ne.s32.totalorder %s1137_s3, %s997_s25  ;;  %p1001_p2 = scmp.lt.u32.totalorder %s997_s25, %s1137_s3 }
 0x35a   :  { %p1003_p3 = pnand %p1001_p2, %p998_p1 }
 0x35c   :  { %1006 = shalt.err (!%p1003_p3)
}
 0x35d   :  { %701 = dma.vmem_to_hbm [thread:$0]  %s699_s21, 128, %s1137_s3, [#allocation4]  }
 0x35e   :  { %1011 = dma.done.wait [#allocation4], 128  }
 0x35f   :  { %1012 = vsyncadd [#allocation4], 4294967168 }
 0x360   :  { %705 = vsyncpa [#allocation3], 1 }
 0x361   :  { %706 = vsyncpa [#allocation6], 1 }
 0x362   :  { %707 = vsyncpa [#allocation4], 1 }

</bundles_post_ra>
